<compile_context>
chip_gen: v6e
topology: v6e:2x2x1
jax: 0.10.0
libtpu: 0.0.40
codegen_flags: <defaults>
</compile_context>

<pallas_src>
import jax
import jax.numpy as jnp
from jax import lax
from jax.experimental import pallas as pl
from jax.experimental.pallas import tpu as pltpu


def _round_up(n, m):
    return ((n + m - 1) // m) * m


def make_quaternion_weight(key, in_features, out_features, scale=0.1):
    """Dense (in, out) weight with quaternion (Hamilton) block structure,
    equivalent to a Parcollet-style QuaternionLinear weight."""
    assert in_features % 4 == 0 and out_features % 4 == 0
    ki, ko = in_features // 4, out_features // 4
    kr_, ki_, kj_, kk_ = jax.random.split(key, 4)
    r = jax.random.normal(kr_, (ki, ko), jnp.float32) * scale
    i = jax.random.normal(ki_, (ki, ko), jnp.float32) * scale
    j = jax.random.normal(kj_, (ki, ko), jnp.float32) * scale
    k = jax.random.normal(kk_, (ki, ko), jnp.float32) * scale
    row_r = jnp.concatenate([r, -i, -j, -k], axis=1)
    row_i = jnp.concatenate([i,  r, -k,  j], axis=1)
    row_j = jnp.concatenate([j,  k,  r, -i], axis=1)
    row_k = jnp.concatenate([k, -j,  i,  r], axis=1)
    return jnp.concatenate([row_r, row_i, row_j, row_k], axis=0)  # (in, out)


# ---------------------------------------------------------------------------
# Fused QGRU kernel: per time chunk -> input projection, recurrence, classifier.
# ---------------------------------------------------------------------------
def _qgru_fused_kernel(x_ref, wx_ref, bx_ref, wh_ref, fcw_ref, fcb_ref,
                       out_ref, h_ref, xp_ref, hseq_ref):
    bp, hpad = h_ref.shape                 # padded batch, padded hidden
    tile_t = x_ref.shape[0] // bp          # timesteps in this chunk

    @pl.when(pl.program_id(0) == 0)
    def _():
        h_ref[...] = jnp.zeros_like(h_ref)

    # (1) Chunk input projection: bf16 MXU operands, f32 accumulate, bias folded.
    xp_ref[...] = (
        jnp.dot(x_ref[...], wx_ref[...], preferred_element_type=jnp.float32)
        + bx_ref[...])

    wh = wh_ref[...]                       # (Hp, 3*Hp) bf16, constant over steps

    def step(t, h):
        row0 = pl.multiple_of(t * bp, bp)
        xp = xp_ref[pl.ds(row0, bp), :]                             # (bp, 3Hp) f32
        hp = jnp.dot(h.astype(jnp.bfloat16), wh,
                     preferred_element_type=jnp.float32)            # (bp, 3Hp) f32
        # 128-aligned gate slices (Hp % 128 == 0): vreg-granular views.
        gr = jax.nn.sigmoid(xp[:, :hpad] + hp[:, :hpad])
        gu = jax.nn.sigmoid(xp[:, hpad:2 * hpad] + hp[:, hpad:2 * hpad])
        r = jnp.tanh(gr * hp[:, 2 * hpad:] + xp[:, 2 * hpad:])
        h_new = r * (1.0 - gu) + gu * h
        hseq_ref[pl.ds(row0, bp), :] = h_new.astype(hseq_ref.dtype)
        return h_new

    h_ref[...] = lax.fori_loop(0, tile_t, step, h_ref[...],
                               unroll=min(tile_t, 8))

    # (3) Chunk classifier: one MXU matmul, lane-dense padded-C store.
    out_ref[...] = (
        jnp.dot(hseq_ref[...], fcw_ref[...], preferred_element_type=jnp.float32)
        + fcb_ref[...]).astype(out_ref.dtype)


def qgru_forward(x, params, *, tile_t=None):
    """x: (T, B, F) float32 -> (T, B, num_classes) float32."""
    T, B, F = x.shape
    H = params["wrh_w"].shape[0]
    C = params["fco_w"].shape[1]

    Hp = _round_up(H, 128)     # lane-aligned gate slices
    Cp = _round_up(C, 128)     # lane-dense classifier store
    Bp = _round_up(B, 16)      # bf16 sublane tile

    if tile_t is None:
        tile_t = next(t for t in (32, 16, 8, 4, 2, 1) if T % t == 0)
    assert T % tile_t == 0, (T, tile_t)

    def pad_cols(w, n):
        return jnp.pad(w, ((0, 0), (0, n - w.shape[1])))

    def pad_rows(w, m):
        return jnp.pad(w, ((0, m - w.shape[0]), (0, 0)))

    # Fused gate weights, column order [reset | update | candidate]; each gate
    # block zero-padded to Hp (and the hidden weights also to Hp rows).
    wx = jnp.concatenate([pad_cols(params["wrx_w"], Hp),
                          pad_cols(params["wux_w"], Hp),
                          pad_cols(params["wx1_w"], Hp)], axis=1)   # (F, 3Hp)
    bx = jnp.concatenate([pad_cols(params["wrx_b"], Hp),
                          pad_cols(params["wux_b"], Hp),
                          pad_cols(params["wx1_b"], Hp)], axis=1)   # (1, 3Hp)
    wh = jnp.concatenate([pad_rows(pad_cols(params["wrh_w"], Hp), Hp),
                          pad_rows(pad_cols(params["wuh_w"], Hp), Hp),
                          pad_rows(pad_cols(params["wh1_w"], Hp), Hp)],
                         axis=1)                                     # (Hp, 3Hp)
    fcw = pad_rows(pad_cols(params["fco_w"], Cp), Hp)                # (Hp, Cp)
    fcb = pad_cols(params["fco_b"], Cp)                              # (1, Cp)

    # Pad batch to the bf16 sublane tile; padded rows never mix with real rows
    # (per-row-independent recurrence) and are sliced off below.
    x_flat = jnp.pad(x, ((0, 0), (0, Bp - B), (0, 0))).reshape(T * Bp, F)

    # bf16 MXU operands; biases / gate math / accumulators stay f32.
    x_bf = x_flat.astype(jnp.bfloat16)
    wx_bf = wx.astype(jnp.bfloat16)
    wh_bf = wh.astype(jnp.bfloat16)
    fcw_bf = fcw.astype(jnp.bfloat16)

    rows = tile_t * Bp
    out_flat = pl.pallas_call(
        _qgru_fused_kernel,
        out_shape=jax.ShapeDtypeStruct((T * Bp, Cp), jnp.float32),
        grid=(T // tile_t,),
        in_specs=[
            pl.BlockSpec((rows, F), lambda k: (k, 0)),        # x chunk
            pl.BlockSpec((F, 3 * Hp), lambda k: (0, 0)),      # fused Wx
            pl.BlockSpec((1, 3 * Hp), lambda k: (0, 0)),      # fused bias
            pl.BlockSpec((Hp, 3 * Hp), lambda k: (0, 0)),     # fused Wh
            pl.BlockSpec((Hp, Cp), lambda k: (0, 0)),         # classifier W
            pl.BlockSpec((1, Cp), lambda k: (0, 0)),          # classifier b
        ],
        out_specs=pl.BlockSpec((rows, Cp), lambda k: (k, 0)),
        scratch_shapes=[
            pltpu.VMEM((Bp, Hp), jnp.float32),                # hidden carry
            pltpu.VMEM((rows, 3 * Hp), jnp.float32),          # chunk projections
            pltpu.VMEM((rows, Hp), jnp.bfloat16),             # chunk hidden slab
        ],
        compiler_params=pltpu.CompilerParams(
            dimension_semantics=("arbitrary",),               # strict time order
            vmem_limit_bytes=32 * 1024 * 1024),
    )(x_bf, wx_bf, bx, wh_bf, fcw_bf, fcb)

    return out_flat.reshape(T, Bp, Cp)[:, :B, :C]


def qgru_reference(x, params):
    """Pure-JAX f32 reference matching the PyTorch forward semantics."""
    def lin(v, w, b=None):
        y = v @ w
        return y if b is None else y + b

    def step(h, xk):
        gr = jax.nn.sigmoid(lin(xk, params["wrx_w"], params["wrx_b"])
                            + lin(h, params["wrh_w"]))
        gu = jax.nn.sigmoid(lin(xk, params["wux_w"], params["wux_b"])
                            + lin(h, params["wuh_w"]))
        r = jnp.tanh(gr * lin(h, params["wh1_w"])
                     + lin(xk, params["wx1_w"], params["wx1_b"]))
        h_new = r * (1.0 - gu) + gu * h
        out = lin(h_new, params["fco_w"], params["fco_b"])
        return h_new, out

    h0 = jnp.zeros((x.shape[1], params["wrh_w"].shape[0]), jnp.float32)
    _, outs = jax.lax.scan(step, h0, x)
    return outs


if __name__ == "__main__":
    # Small shapes consistent with the module: feat, hidden divisible by 4.
    T, B = 8, 2
    feat_size, hidden_size = 16, 32
    num_classes = feat_size + 1  # num_classes=None path

    root = jax.random.PRNGKey(0)
    keys = jax.random.split(root, 12)

    params = {
        "wrx_w": make_quaternion_weight(keys[0], feat_size, hidden_size),
        "wrx_b": jax.random.normal(keys[1], (1, hidden_size), jnp.float32) * 0.1,
        "wx1_w": make_quaternion_weight(keys[2], feat_size, hidden_size),
        "wx1_b": jax.random.normal(keys[3], (1, hidden_size), jnp.float32) * 0.1,
        "wux_w": make_quaternion_weight(keys[4], feat_size, hidden_size),
        "wux_b": jax.random.normal(keys[5], (1, hidden_size), jnp.float32) * 0.1,
        "wrh_w": make_quaternion_weight(keys[6], hidden_size, hidden_size),
        "wh1_w": make_quaternion_weight(keys[7], hidden_size, hidden_size),
        "wuh_w": make_quaternion_weight(keys[8], hidden_size, hidden_size),
        # nn.Linear(hidden, num_classes): stored directly as (H, C).
        "fco_w": jax.random.normal(keys[9], (hidden_size, num_classes),
                                   jnp.float32) * 0.1,
        "fco_b": jax.random.normal(keys[10], (1, num_classes), jnp.float32) * 0.1,
    }

    x = jax.random.normal(keys[11], (T, B, feat_size), jnp.float32)

    # tile_t=4 -> grid=(2,) so the VMEM hidden-state carry across grid steps
    # is exercised.
    out = jax.block_until_ready(qgru_forward(x, params, tile_t=4))
    ref = jax.block_until_ready(qgru_reference(x, params))

    assert out.shape == (T, B, num_classes), out.shape
    max_diff = float(jnp.max(jnp.abs(out - ref)))
    # bf16 MXU operands (f32 accumulation / gate math) vs pure-f32 reference.
    assert jnp.allclose(out, ref, atol=3e-2, rtol=1e-2), max_diff

    print("KERNEL_OK")
</pallas_src>

<mosaic_0001>
module attributes {stable_mosaic.version = 11 : i64} {
  func.func @_qgru_fused_kernel(%arg0: i32, %arg1: memref<64x16xbf16, #tpu.memory_space<vmem>>, %arg2: memref<16x384xbf16, #tpu.memory_space<vmem>>, %arg3: memref<1x384xf32, #tpu.memory_space<vmem>>, %arg4: memref<128x384xbf16, #tpu.memory_space<vmem>>, %arg5: memref<128x128xbf16, #tpu.memory_space<vmem>>, %arg6: memref<1x128xf32, #tpu.memory_space<vmem>>, %arg7: memref<64x128xf32, #tpu.memory_space<vmem>>, %arg8: memref<16x128xf32, #tpu.memory_space<vmem>>, %arg9: memref<64x384xf32, #tpu.memory_space<vmem>>, %arg10: memref<64x128xbf16, #tpu.memory_space<vmem>>) attributes {dimension_semantics = [#tpu.dimension_semantics<arbitrary>], iteration_bounds = array<i64: 2>, scalar_prefetch = 0 : i64, scratch_operands = 3 : i64, tpu.core_type = #tpu.core_type<tc>, window_params = [{transform_indices = @transform_0, window_bounds = array<i64: 64, 16>}, {pipeline_mode = #tpu.pipeline_mode<synchronous>, transform_indices = @transform_1, window_bounds = array<i64: 16, 384>}, {pipeline_mode = #tpu.pipeline_mode<synchronous>, transform_indices = @transform_2, window_bounds = array<i64: 1, 384>}, {pipeline_mode = #tpu.pipeline_mode<synchronous>, transform_indices = @transform_3, window_bounds = array<i64: 128, 384>}, {pipeline_mode = #tpu.pipeline_mode<synchronous>, transform_indices = @transform_4, window_bounds = array<i64: 128, 128>}, {pipeline_mode = #tpu.pipeline_mode<synchronous>, transform_indices = @transform_5, window_bounds = array<i64: 1, 128>}, {transform_indices = @transform_6, window_bounds = array<i64: 64, 128>}]} {
    %c0_i32 = arith.constant 0 : i32
    %0 = arith.cmpi eq, %arg0, %c0_i32 : i32
    %1 = arith.extui %0 : i1 to i32
    %c0_i32_0 = arith.constant 0 : i32
    %2 = arith.cmpi ne, %1, %c0_i32_0 : i32
    scf.if %2 {
      %cst_51 = arith.constant 0.000000e+00 : f32
      %160 = vector.broadcast %cst_51 : f32 to vector<16x128xf32>
      %c0_52 = arith.constant 0 : index
      %c0_53 = arith.constant 0 : index
      %161 = vector.load %arg8[%c0_52, %c0_53] : memref<16x128xf32, #tpu.memory_space<vmem>>, vector<16x128xf32>
      tpu.vector_store %arg8[%c0_52, %c0_53], %160 {strides = array<i32>} : memref<16x128xf32, #tpu.memory_space<vmem>>, vector<16x128xf32>,
    } else {
    }
    %c0 = arith.constant 0 : index
    %c0_1 = arith.constant 0 : index
    %3 = vector.load %arg1[%c0, %c0_1] : memref<64x16xbf16, #tpu.memory_space<vmem>>, vector<64x16xbf16>
    %c0_2 = arith.constant 0 : index
    %c0_3 = arith.constant 0 : index
    %4 = vector.load %arg2[%c0_2, %c0_3] : memref<16x384xbf16, #tpu.memory_space<vmem>>, vector<16x384xbf16>
    %cst = arith.constant dense<0.000000e+00> : vector<64x384xf32>
    %5 = tpu.matmul %3, %4, %cst {dimension_numbers = #tpu.dot_dimension_numbers<[1], [0], [0], [1], [0, 0, 1, 1], [], []>} : vector<64x16xbf16>, vector<16x384xbf16>, vector<64x384xf32> -> vector<64x384xf32>
    %c0_4 = arith.constant 0 : index
    %c0_5 = arith.constant 0 : index
    %6 = vector.load %arg3[%c0_4, %c0_5] : memref<1x384xf32, #tpu.memory_space<vmem>>, vector<1x384xf32>
    %7 = vector.broadcast %6 : vector<1x384xf32> to vector<64x384xf32>
    %8 = arith.addf %5, %7 : vector<64x384xf32>
    %c0_6 = arith.constant 0 : index
    %c0_7 = arith.constant 0 : index
    %9 = vector.load %arg9[%c0_6, %c0_7] : memref<64x384xf32, #tpu.memory_space<vmem>>, vector<64x384xf32>
    tpu.vector_store %arg9[%c0_6, %c0_7], %8 {strides = array<i32>} : memref<64x384xf32, #tpu.memory_space<vmem>>, vector<64x384xf32>,
    %c0_8 = arith.constant 0 : index
    %c0_9 = arith.constant 0 : index
    %10 = vector.load %arg4[%c0_8, %c0_9] : memref<128x384xbf16, #tpu.memory_space<vmem>>, vector<128x384xbf16>
    %c0_10 = arith.constant 0 : index
    %c0_11 = arith.constant 0 : index
    %11 = vector.load %arg8[%c0_10, %c0_11] : memref<16x128xf32, #tpu.memory_space<vmem>>, vector<16x128xf32>
    %c0_i32_12 = arith.constant 0 : i32
    %c16_i32 = arith.constant 16 : i32
    %12 = arith.muli %c0_i32_12, %c16_i32 : i32
    %13 = tpu.assume_multiple %12, 16 : i32
    %14 = arith.index_cast %13 : i32 to index
    %c0_13 = arith.constant 0 : index
    %15 = vector.load %arg9[%14, %c0_13] : memref<64x384xf32, #tpu.memory_space<vmem>>, vector<16x384xf32>
    %16 = arith.truncf %11 : vector<16x128xf32> to vector<16x128xbf16>
    %cst_14 = arith.constant dense<0.000000e+00> : vector<16x384xf32>
    %17 = tpu.matmul %16, %10, %cst_14 {dimension_numbers = #tpu.dot_dimension_numbers<[1], [0], [0], [1], [0, 0, 1, 1], [], []>} : vector<16x128xbf16>, vector<128x384xbf16>, vector<16x384xf32> -> vector<16x384xf32>
    %18 = vector.extract_strided_slice %15 {offsets = [0, 0], sizes = [16, 128], strides = [1, 1]} : vector<16x384xf32> to vector<16x128xf32>
    %19 = vector.extract_strided_slice %17 {offsets = [0, 0], sizes = [16, 128], strides = [1, 1]} : vector<16x384xf32> to vector<16x128xf32>
    %20 = arith.addf %18, %19 : vector<16x128xf32>
    %21 = arith.negf %20 : vector<16x128xf32>
    %22 = math.exp %21 : vector<16x128xf32>
    %cst_15 = arith.constant 1.000000e+00 : f32
    %23 = vector.broadcast %cst_15 : f32 to vector<16x128xf32>
    %24 = arith.addf %23, %22 : vector<16x128xf32>
    %25 = arith.divf %23, %24 : vector<16x128xf32>
    %26 = vector.extract_strided_slice %15 {offsets = [0, 128], sizes = [16, 128], strides = [1, 1]} : vector<16x384xf32> to vector<16x128xf32>
    %27 = vector.extract_strided_slice %17 {offsets = [0, 128], sizes = [16, 128], strides = [1, 1]} : vector<16x384xf32> to vector<16x128xf32>
    %28 = arith.addf %26, %27 : vector<16x128xf32>
    %29 = arith.negf %28 : vector<16x128xf32>
    %30 = math.exp %29 : vector<16x128xf32>
    %cst_16 = arith.constant 1.000000e+00 : f32
    %31 = vector.broadcast %cst_16 : f32 to vector<16x128xf32>
    %32 = arith.addf %31, %30 : vector<16x128xf32>
    %33 = arith.divf %31, %32 : vector<16x128xf32>
    %34 = vector.extract_strided_slice %17 {offsets = [0, 256], sizes = [16, 128], strides = [1, 1]} : vector<16x384xf32> to vector<16x128xf32>
    %35 = arith.mulf %25, %34 : vector<16x128xf32>
    %36 = vector.extract_strided_slice %15 {offsets = [0, 256], sizes = [16, 128], strides = [1, 1]} : vector<16x384xf32> to vector<16x128xf32>
    %37 = arith.addf %35, %36 : vector<16x128xf32>
    %38 = math.tanh %37 : vector<16x128xf32>
    %cst_17 = arith.constant 1.000000e+00 : f32
    %39 = vector.broadcast %cst_17 : f32 to vector<16x128xf32>
    %40 = arith.subf %39, %33 : vector<16x128xf32>
    %41 = arith.mulf %38, %40 : vector<16x128xf32>
    %42 = arith.mulf %33, %11 : vector<16x128xf32>
    %43 = arith.addf %41, %42 : vector<16x128xf32>
    %44 = arith.truncf %43 : vector<16x128xf32> to vector<16x128xbf16>
    %45 = arith.index_cast %13 : i32 to index
    %c0_18 = arith.constant 0 : index
    %46 = vector.load %arg10[%45, %c0_18] : memref<64x128xbf16, #tpu.memory_space<vmem>>, vector<16x128xbf16>
    tpu.vector_store %arg10[%45, %c0_18], %44 {strides = array<i32>} : memref<64x128xbf16, #tpu.memory_space<vmem>>, vector<16x128xbf16>,
    %c1_i32 = arith.constant 1 : i32
    %c16_i32_19 = arith.constant 16 : i32
    %47 = arith.muli %c1_i32, %c16_i32_19 : i32
    %48 = tpu.assume_multiple %47, 16 : i32
    %49 = arith.index_cast %48 : i32 to index
    %c0_20 = arith.constant 0 : index
    %50 = vector.load %arg9[%49, %c0_20] : memref<64x384xf32, #tpu.memory_space<vmem>>, vector<16x384xf32>
    %51 = arith.truncf %43 : vector<16x128xf32> to vector<16x128xbf16>
    %cst_21 = arith.constant dense<0.000000e+00> : vector<16x384xf32>
    %52 = tpu.matmul %51, %10, %cst_21 {dimension_numbers = #tpu.dot_dimension_numbers<[1], [0], [0], [1], [0, 0, 1, 1], [], []>} : vector<16x128xbf16>, vector<128x384xbf16>, vector<16x384xf32> -> vector<16x384xf32>
    %53 = vector.extract_strided_slice %50 {offsets = [0, 0], sizes = [16, 128], strides = [1, 1]} : vector<16x384xf32> to vector<16x128xf32>
    %54 = vector.extract_strided_slice %52 {offsets = [0, 0], sizes = [16, 128], strides = [1, 1]} : vector<16x384xf32> to vector<16x128xf32>
    %55 = arith.addf %53, %54 : vector<16x128xf32>
    %56 = arith.negf %55 : vector<16x128xf32>
    %57 = math.exp %56 : vector<16x128xf32>
    %cst_22 = arith.constant 1.000000e+00 : f32
    %58 = vector.broadcast %cst_22 : f32 to vector<16x128xf32>
    %59 = arith.addf %58, %57 : vector<16x128xf32>
    %60 = arith.divf %58, %59 : vector<16x128xf32>
    %61 = vector.extract_strided_slice %50 {offsets = [0, 128], sizes = [16, 128], strides = [1, 1]} : vector<16x384xf32> to vector<16x128xf32>
    %62 = vector.extract_strided_slice %52 {offsets = [0, 128], sizes = [16, 128], strides = [1, 1]} : vector<16x384xf32> to vector<16x128xf32>
    %63 = arith.addf %61, %62 : vector<16x128xf32>
    %64 = arith.negf %63 : vector<16x128xf32>
    %65 = math.exp %64 : vector<16x128xf32>
    %cst_23 = arith.constant 1.000000e+00 : f32
    %66 = vector.broadcast %cst_23 : f32 to vector<16x128xf32>
    %67 = arith.addf %66, %65 : vector<16x128xf32>
    %68 = arith.divf %66, %67 : vector<16x128xf32>
    %69 = vector.extract_strided_slice %52 {offsets = [0, 256], sizes = [16, 128], strides = [1, 1]} : vector<16x384xf32> to vector<16x128xf32>
    %70 = arith.mulf %60, %69 : vector<16x128xf32>
    %71 = vector.extract_strided_slice %50 {offsets = [0, 256], sizes = [16, 128], strides = [1, 1]} : vector<16x384xf32> to vector<16x128xf32>
    %72 = arith.addf %70, %71 : vector<16x128xf32>
    %73 = math.tanh %72 : vector<16x128xf32>
    %cst_24 = arith.constant 1.000000e+00 : f32
    %74 = vector.broadcast %cst_24 : f32 to vector<16x128xf32>
    %75 = arith.subf %74, %68 : vector<16x128xf32>
    %76 = arith.mulf %73, %75 : vector<16x128xf32>
    %77 = arith.mulf %68, %43 : vector<16x128xf32>
    %78 = arith.addf %76, %77 : vector<16x128xf32>
    %79 = arith.truncf %78 : vector<16x128xf32> to vector<16x128xbf16>
    %80 = arith.index_cast %48 : i32 to index
    %c0_25 = arith.constant 0 : index
    %81 = vector.load %arg10[%80, %c0_25] : memref<64x128xbf16, #tpu.memory_space<vmem>>, vector<16x128xbf16>
    tpu.vector_store %arg10[%80, %c0_25], %79 {strides = array<i32>} : memref<64x128xbf16, #tpu.memory_space<vmem>>, vector<16x128xbf16>,
    %c2_i32 = arith.constant 2 : i32
    %c16_i32_26 = arith.constant 16 : i32
    %82 = arith.muli %c2_i32, %c16_i32_26 : i32
    %83 = tpu.assume_multiple %82, 16 : i32
    %84 = arith.index_cast %83 : i32 to index
    %c0_27 = arith.constant 0 : index
    %85 = vector.load %arg9[%84, %c0_27] : memref<64x384xf32, #tpu.memory_space<vmem>>, vector<16x384xf32>
    %86 = arith.truncf %78 : vector<16x128xf32> to vector<16x128xbf16>
    %cst_28 = arith.constant dense<0.000000e+00> : vector<16x384xf32>
    %87 = tpu.matmul %86, %10, %cst_28 {dimension_numbers = #tpu.dot_dimension_numbers<[1], [0], [0], [1], [0, 0, 1, 1], [], []>} : vector<16x128xbf16>, vector<128x384xbf16>, vector<16x384xf32> -> vector<16x384xf32>
    %88 = vector.extract_strided_slice %85 {offsets = [0, 0], sizes = [16, 128], strides = [1, 1]} : vector<16x384xf32> to vector<16x128xf32>
    %89 = vector.extract_strided_slice %87 {offsets = [0, 0], sizes = [16, 128], strides = [1, 1]} : vector<16x384xf32> to vector<16x128xf32>
    %90 = arith.addf %88, %89 : vector<16x128xf32>
    %91 = arith.negf %90 : vector<16x128xf32>
    %92 = math.exp %91 : vector<16x128xf32>
    %cst_29 = arith.constant 1.000000e+00 : f32
    %93 = vector.broadcast %cst_29 : f32 to vector<16x128xf32>
    %94 = arith.addf %93, %92 : vector<16x128xf32>
    %95 = arith.divf %93, %94 : vector<16x128xf32>
    %96 = vector.extract_strided_slice %85 {offsets = [0, 128], sizes = [16, 128], strides = [1, 1]} : vector<16x384xf32> to vector<16x128xf32>
    %97 = vector.extract_strided_slice %87 {offsets = [0, 128], sizes = [16, 128], strides = [1, 1]} : vector<16x384xf32> to vector<16x128xf32>
    %98 = arith.addf %96, %97 : vector<16x128xf32>
    %99 = arith.negf %98 : vector<16x128xf32>
    %100 = math.exp %99 : vector<16x128xf32>
    %cst_30 = arith.constant 1.000000e+00 : f32
    %101 = vector.broadcast %cst_30 : f32 to vector<16x128xf32>
    %102 = arith.addf %101, %100 : vector<16x128xf32>
    %103 = arith.divf %101, %102 : vector<16x128xf32>
    %104 = vector.extract_strided_slice %87 {offsets = [0, 256], sizes = [16, 128], strides = [1, 1]} : vector<16x384xf32> to vector<16x128xf32>
    %105 = arith.mulf %95, %104 : vector<16x128xf32>
    %106 = vector.extract_strided_slice %85 {offsets = [0, 256], sizes = [16, 128], strides = [1, 1]} : vector<16x384xf32> to vector<16x128xf32>
    %107 = arith.addf %105, %106 : vector<16x128xf32>
    %108 = math.tanh %107 : vector<16x128xf32>
    %cst_31 = arith.constant 1.000000e+00 : f32
    %109 = vector.broadcast %cst_31 : f32 to vector<16x128xf32>
    %110 = arith.subf %109, %103 : vector<16x128xf32>
    %111 = arith.mulf %108, %110 : vector<16x128xf32>
    %112 = arith.mulf %103, %78 : vector<16x128xf32>
    %113 = arith.addf %111, %112 : vector<16x128xf32>
    %114 = arith.truncf %113 : vector<16x128xf32> to vector<16x128xbf16>
    %115 = arith.index_cast %83 : i32 to index
    %c0_32 = arith.constant 0 : index
    %116 = vector.load %arg10[%115, %c0_32] : memref<64x128xbf16, #tpu.memory_space<vmem>>, vector<16x128xbf16>
    tpu.vector_store %arg10[%115, %c0_32], %114 {strides = array<i32>} : memref<64x128xbf16, #tpu.memory_space<vmem>>, vector<16x128xbf16>,
    %c3_i32 = arith.constant 3 : i32
    %c16_i32_33 = arith.constant 16 : i32
    %117 = arith.muli %c3_i32, %c16_i32_33 : i32
    %118 = tpu.assume_multiple %117, 16 : i32
    %119 = arith.index_cast %118 : i32 to index
    %c0_34 = arith.constant 0 : index
    %120 = vector.load %arg9[%119, %c0_34] : memref<64x384xf32, #tpu.memory_space<vmem>>, vector<16x384xf32>
    %121 = arith.truncf %113 : vector<16x128xf32> to vector<16x128xbf16>
    %cst_35 = arith.constant dense<0.000000e+00> : vector<16x384xf32>
    %122 = tpu.matmul %121, %10, %cst_35 {dimension_numbers = #tpu.dot_dimension_numbers<[1], [0], [0], [1], [0, 0, 1, 1], [], []>} : vector<16x128xbf16>, vector<128x384xbf16>, vector<16x384xf32> -> vector<16x384xf32>
    %123 = vector.extract_strided_slice %120 {offsets = [0, 0], sizes = [16, 128], strides = [1, 1]} : vector<16x384xf32> to vector<16x128xf32>
    %124 = vector.extract_strided_slice %122 {offsets = [0, 0], sizes = [16, 128], strides = [1, 1]} : vector<16x384xf32> to vector<16x128xf32>
    %125 = arith.addf %123, %124 : vector<16x128xf32>
    %126 = arith.negf %125 : vector<16x128xf32>
    %127 = math.exp %126 : vector<16x128xf32>
    %cst_36 = arith.constant 1.000000e+00 : f32
    %128 = vector.broadcast %cst_36 : f32 to vector<16x128xf32>
    %129 = arith.addf %128, %127 : vector<16x128xf32>
    %130 = arith.divf %128, %129 : vector<16x128xf32>
    %131 = vector.extract_strided_slice %120 {offsets = [0, 128], sizes = [16, 128], strides = [1, 1]} : vector<16x384xf32> to vector<16x128xf32>
    %132 = vector.extract_strided_slice %122 {offsets = [0, 128], sizes = [16, 128], strides = [1, 1]} : vector<16x384xf32> to vector<16x128xf32>
    %133 = arith.addf %131, %132 : vector<16x128xf32>
    %134 = arith.negf %133 : vector<16x128xf32>
    %135 = math.exp %134 : vector<16x128xf32>
    %cst_37 = arith.constant 1.000000e+00 : f32
    %136 = vector.broadcast %cst_37 : f32 to vector<16x128xf32>
    %137 = arith.addf %136, %135 : vector<16x128xf32>
    %138 = arith.divf %136, %137 : vector<16x128xf32>
    %139 = vector.extract_strided_slice %122 {offsets = [0, 256], sizes = [16, 128], strides = [1, 1]} : vector<16x384xf32> to vector<16x128xf32>
    %140 = arith.mulf %130, %139 : vector<16x128xf32>
    %141 = vector.extract_strided_slice %120 {offsets = [0, 256], sizes = [16, 128], strides = [1, 1]} : vector<16x384xf32> to vector<16x128xf32>
    %142 = arith.addf %140, %141 : vector<16x128xf32>
    %143 = math.tanh %142 : vector<16x128xf32>
    %cst_38 = arith.constant 1.000000e+00 : f32
    %144 = vector.broadcast %cst_38 : f32 to vector<16x128xf32>
    %145 = arith.subf %144, %138 : vector<16x128xf32>
    %146 = arith.mulf %143, %145 : vector<16x128xf32>
    %147 = arith.mulf %138, %113 : vector<16x128xf32>
    %148 = arith.addf %146, %147 : vector<16x128xf32>
    %149 = arith.truncf %148 : vector<16x128xf32> to vector<16x128xbf16>
    %150 = arith.index_cast %118 : i32 to index
    %c0_39 = arith.constant 0 : index
    %151 = vector.load %arg10[%150, %c0_39] : memref<64x128xbf16, #tpu.memory_space<vmem>>, vector<16x128xbf16>
    tpu.vector_store %arg10[%150, %c0_39], %149 {strides = array<i32>} : memref<64x128xbf16, #tpu.memory_space<vmem>>, vector<16x128xbf16>,
    %c4_i32 = arith.constant 4 : i32
    %c0_40 = arith.constant 0 : index
    %c0_41 = arith.constant 0 : index
    %152 = vector.load %arg8[%c0_40, %c0_41] : memref<16x128xf32, #tpu.memory_space<vmem>>, vector<16x128xf32>
    tpu.vector_store %arg8[%c0_40, %c0_41], %148 {strides = array<i32>} : memref<16x128xf32, #tpu.memory_space<vmem>>, vector<16x128xf32>,
    %c0_42 = arith.constant 0 : index
    %c0_43 = arith.constant 0 : index
    %153 = vector.load %arg10[%c0_42, %c0_43] : memref<64x128xbf16, #tpu.memory_space<vmem>>, vector<64x128xbf16>
    %c0_44 = arith.constant 0 : index
    %c0_45 = arith.constant 0 : index
    %154 = vector.load %arg5[%c0_44, %c0_45] : memref<128x128xbf16, #tpu.memory_space<vmem>>, vector<128x128xbf16>
    %cst_46 = arith.constant dense<0.000000e+00> : vector<64x128xf32>
    %155 = tpu.matmul %153, %154, %cst_46 {dimension_numbers = #tpu.dot_dimension_numbers<[1], [0], [0], [1], [0, 0, 1, 1], [], []>} : vector<64x128xbf16>, vector<128x128xbf16>, vector<64x128xf32> -> vector<64x128xf32>
    %c0_47 = arith.constant 0 : index
    %c0_48 = arith.constant 0 : index
    %156 = vector.load %arg6[%c0_47, %c0_48] : memref<1x128xf32, #tpu.memory_space<vmem>>, vector<1x128xf32>
    %157 = vector.broadcast %156 : vector<1x128xf32> to vector<64x128xf32>
    %158 = arith.addf %155, %157 : vector<64x128xf32>
    %c0_49 = arith.constant 0 : index
    %c0_50 = arith.constant 0 : index
    %159 = vector.load %arg7[%c0_49, %c0_50] : memref<64x128xf32, #tpu.memory_space<vmem>>, vector<64x128xf32>
    tpu.vector_store %arg7[%c0_49, %c0_50], %158 {strides = array<i32>} : memref<64x128xf32, #tpu.memory_space<vmem>>, vector<64x128xf32>,
    return
  }
  func.func @transform_0(%arg0: i32) -> (i32, i32) {
    %c0_i32 = arith.constant 0 : i32
    %c0_i32_0 = arith.constant 0 : i32
    return %arg0, %c0_i32 : i32, i32
  }
  func.func @transform_1(%arg0: i32) -> (i32, i32) {
    %c0_i32 = arith.constant 0 : i32
    %c0_i32_0 = arith.constant 0 : i32
    %c0_i32_1 = arith.constant 0 : i32
    return %c0_i32, %c0_i32_0 : i32, i32
  }
  func.func @transform_2(%arg0: i32) -> (i32, i32) {
    %c0_i32 = arith.constant 0 : i32
    %c0_i32_0 = arith.constant 0 : i32
    %c0_i32_1 = arith.constant 0 : i32
    return %c0_i32, %c0_i32_0 : i32, i32
  }
  func.func @transform_3(%arg0: i32) -> (i32, i32) {
    %c0_i32 = arith.constant 0 : i32
    %c0_i32_0 = arith.constant 0 : i32
    %c0_i32_1 = arith.constant 0 : i32
    return %c0_i32, %c0_i32_0 : i32, i32
  }
  func.func @transform_4(%arg0: i32) -> (i32, i32) {
    %c0_i32 = arith.constant 0 : i32
    %c0_i32_0 = arith.constant 0 : i32
    %c0_i32_1 = arith.constant 0 : i32
    return %c0_i32, %c0_i32_0 : i32, i32
  }
  func.func @transform_5(%arg0: i32) -> (i32, i32) {
    %c0_i32 = arith.constant 0 : i32
    %c0_i32_0 = arith.constant 0 : i32
    %c0_i32_1 = arith.constant 0 : i32
    return %c0_i32, %c0_i32_0 : i32, i32
  }
  func.func @transform_6(%arg0: i32) -> (i32, i32) {
    %c0_i32 = arith.constant 0 : i32
    %c0_i32_0 = arith.constant 0 : i32
    return %arg0, %c0_i32 : i32, i32
  }
}

</mosaic_0001>

<bundles_post_ra>
// kernel: tpu_custom_call.1
= control target key start
LH: loop header
LB: loop body
LE: loop exit
PB: predicated region body
PF: predicated region fallthrough
CT: control target
= control target key end

     0   :  { %11 = vsyncpa [#allocation6], 0  ;;  %s2724_s0 = inlined_call_operand.vmem [shape: bf16[128,16], index: 0, kind: input, shape index: {}]   ;;  %s2725_s1 = inlined_call_operand.hbm [shape: bf16[16,384], index: 1, kind: input, shape index: {}]   ;;  %s2726_s2 = inlined_call_operand.vmem [shape: f32[1,384], index: 2, kind: input, shape index: {}]   ;;  %s2727_s3 = inlined_call_operand.hbm [shape: bf16[128,384], index: 3, kind: input, shape index: {}]   ;;  %s2728_s4 = inlined_call_operand.vmem [shape: bf16[128,128], index: 4, kind: input, shape index: {}]   ;;  %s2729_s5 = inlined_call_operand.vmem [shape: f32[1,128], index: 5, kind: input, shape index: {}]   ;;  %s2730_s6 = inlined_call_operand.hbm [shape: f32[128,128], index: 6, kind: output, shape index: {}]  }
   0x1   :  { %12 = vsyncpa [#allocation9], 0 }
   0x2   :  { %13 = vsyncpa [#allocation7], 0 }
   0x3   :  { %15 = vsyncpa [#allocation7 + $0x1], 0  ;;  %s2212_s21 = smov 0   ;;  %s2214_s22 = smov 0  }
   0x4   :  { %s2216_s23 = smov 0   ;;  %s2218_s24 = smov 0  }
   0x5 LB: > { %s2233_s25 = sadd.s32 4294967295, %s2164_s24   ;;  %s1555_s26 = sadd.s32 4294967294, %s2164_s24   ;;  %s2164_s24 = sphi %s2218_s24, %s2755_s24   ;;  %s2160_s23 = sphi %s2216_s23, %s2754_s23   ;;  %s2156_s22 = sphi %s2214_s22, %s2753_s22   ;;  %s2152_s21 = sphi %s2212_s21, %s2752_s21  }
   0x6   : > { %s2237_s27 = sadd.s32 1, %s2164_s24   ;;  %s159_s28 = sadd.s32 1, %s2160_s23 }
   0x7   : > { %s156_s29 = ssub.s32 %s2164_s24, %s2237_s27  ;;  %p169_p0 = scmp.ne.s32.totalorder %s2160_s23, %s2156_s22 }
   0x8   : > { %p157_p1 = scmp.eq.s32.totalorder %s156_s29, 0  ;;  %p170_p2 = scmp.eq.s32.totalorder %s2233_s25, 1 }
   0x9   : > { %p175_p3 = scmp.ne.s32.totalorder %s2156_s22, %s2152_s21  ;;  %p176_p4 = scmp.eq.s32.totalorder %s1555_s26, 1 }
   0xa   : > { %s2248_s30 = scalar_select %p157_p1, %s2160_s23, %s159_s28  }
   0xb   : > { %p2250_p5 = por %p170_p2, %p169_p0  ;;  %p2254_p6 = por %p176_p4, %p175_p3 }
   0xc   : > { %p1556_p7 = scmp.ge.s32.totalorder %s2164_s24, 1  ;;  %p183_p8 = scmp.lt.s32.totalorder %s2164_s24, 3 }
   0xd   : > { %s2737_s8 = scalar_select %p2254_p6, 1, 0 }
   0xe   : > { %p2731_p10 = scmp.eq.s32.totalorder %s2233_s25, 0  ;;  %p2262_p11 = pnand %p1556_p7, %p183_p8 }
   0xf   : > { %s2166_s10 = smov [#allocation5]   ;;  %s2167_s13 = smov [#allocation8]  }
  0x10   : > { %s195_s11 = sshll.u32 %s2166_s10, 4  ;;  %p1854_p12 = pneg %p2262_p11  ;;  %s196_s11 = int_to_ptr.vmem [resolvable:$true] %s195_s11 }
  0x11   : > { %s211_s14 = sshll.u32 %s2167_s13, 4  ;;  %s2055_s15 = scalar_lea.vmem %s196_s11, 384  ;;  %s212_s14 = int_to_ptr.vmem [resolvable:$true] %s211_s14 }
  0x12   : > { %p2270_p13 = pnand %p2731_p10, %p1854_p12  ;;  %p2056_p1 = scmp.ne.s32.totalorder %s196_s11, %s2055_s15 }
  0x13   : > { %p2063_p4 = scmp.lt.s32.totalorder %s196_s11, %s196_s11  ;;  %p2064_p7 = scmp.lt.s32.totalorder %s2055_s15, %s2055_s15 }
  0x14   : > { %p2046_p0 = pneg %p2270_p13 }
  0x15   : > { %p2065_p8 = por %p2064_p7, %p2063_p4 }
  0x16   : > { %p2058_p2 = pnand %p2056_p1, %p2046_p0 }
  0x18   : > { %p2059_p3 = pneg %p2058_p2 }
  0x1a   : > { %p2066_p12 = pnand %p2065_p8, %p2059_p3 }
  0x1c   : > { %2069 = shalt.err (!%p2066_p12)
}
  0x1d   : > { %s2168_s16 = smov 192   ;;  %s2169_s17 = smov 12  }
  0x1e   : > { %1857 = dma.hbm_to_vmem [thread:$0]  (!%p2270_p13), %s2725_s1, 384, %s196_s11, [#allocation6], %s2168_s16, %s2168_s16, %s2169_s17  }
  0x1f   : > { %s2081_s20 = scalar_lea.vmem %s212_s14, 3072  ;;  %p2089_p10 = scmp.lt.s32.totalorder %s212_s14, %s212_s14 }
  0x20   : > { %p2082_p9 = scmp.ne.s32.totalorder %s212_s14, %s2081_s20  ;;  %p2090_p6 = scmp.lt.s32.totalorder %s2081_s20, %s2081_s20 }
  0x22   : > { %p2084_p1 = pnand %p2082_p9, %p2046_p0  ;;  %p2091_p4 = por %p2090_p6, %p2089_p10 }
  0x24   : > { %p2085_p2 = pneg %p2084_p1 }
  0x26   : > { %p2092_p3 = pnand %p2091_p4, %p2085_p2 }
  0x28   : > { %2095 = shalt.err (!%p2092_p3)
}
  0x29   : > { %1860 = dma.hbm_to_vmem [thread:$0]  (!%p2270_p13), %s2727_s3, 3072, %s212_s14, [#allocation9], %s2168_s16, %s2168_s16, %s2169_s17  }
  0x2a   : > { %242 = sbr.rel (%p2262_p11) target bundleno = 1344 (0x540), region = 44 }
  0x2f   : > { %p2740_p7 = scmp.eq.s32.totalorder %s2233_s25, 0 }
  0x31   : > { %2139 = dma.done.wait (%p2740_p7), [#allocation6], 384   ;;  %p2741_p9 = pmov %p2740_p7 }
  0x32   : > { %p2742_p0 = pmov %p2740_p7 }
  0x33   : > { %2141 = vsyncadd (%p2741_p9), [#allocation6], 4294966912 }
  0x34   : > { %2143 = dma.done.wait (%p2742_p0), [#allocation9], 3072   ;;  %p2743_p6 = pmov %p2742_p0 }
  0x35   : > { %s273_s29 = sand.u32 1, %s2156_s22   ;;  %s1564_s10 = sshll.u32 %s2233_s25, 3 }
  0x36   : > { %2145 = vsyncadd (%p2743_p6), [#allocation9], 4294964224  ;;  %s1563_s9 = sshll.u32 %s273_s29, 6  ;;  %p277_p10 = scmp.lt.s32.totalorder %s1564_s10, 15 }
  0x37   : > { %s2309_s15 = scalar_lea.vmem [#allocation10], %s1563_s9  ;;  %p2744_p11 = scmp.ne.s32.totalorder %s2233_s25, 0 }
  0x38   : > { %s2757_s10 = smov (!%p277_p10, %s1564_s10), 15 }
  0x39   : > { %s1565_s11 = sshll.u32 %s2757_s10, 2  ;;  %287 = sbr.rel (%p2744_p11) target bundleno = 64 (0x40), region = 56 }
  0x3a   : > { %s280_s14 = scalar_lea.vmem %s2724_s0, %s1565_s11 }
  0x3e   : > { %v2170_v0 = vmov 0.0  }
  0x3f   : > { %288 = vst [vmem:[#allocation2] sm:$0xff] %v2170_v0  ;;  %289 = vst [vmem:[#allocation2 + $0x8] sm:$0xff] %v2170_v0 }
  0x40 PF: > { %v1912_v1 = vld [vmem:[#allocation5 + $0x8] ss:$12 sps:$4 sm:$0xff]   ;;  %vm355_vm0 = vcmask 130048   ;;  %v1914_v3 = vld [vmem:[%s280_s14 + $0x8] sm:$0xff]   ;;  %v2314_v4 = vld [vmem:[#allocation8 + $0xac] ss:$12 sps:$4 sm:$0xff]   ;;  %v304_v37 = vlaneseq }
  0x41   : > { %v1913_v2 = vld [vmem:[%s280_s14] sm:$0xff]   ;;  %1730 = vmatprep.subr.bf16.mxu1 %v1912_v1  ;;  %v2316_v5 = vld [vmem:[#allocation8 + $0xa8] ss:$12 sps:$4 sm:$0xff]   ;;  %v2732_v6 = vmov 0   ;;  %v2331_v11 = vld [vmem:[#allocation8 + $0x64] ss:$12 sps:$4 sm:$0xff]  }
  0x42   : > { %1731 = vmatpush3.bf16.msra.mxu1 %v1912_v1  ;;  %1732 = vmatprep.mubr.msk.bf16.mxu1 %vm355_vm0, %v1913_v2  ;;  %v2320_v7 = vld [vmem:[#allocation8 + $0x94] ss:$12 sps:$4 sm:$0xff]   ;;  %v2324_v8 = vld [vmem:[#allocation8 + $0x90] ss:$12 sps:$4 sm:$0xff]   ;;  %v2329_v10 = vld [vmem:[#allocation8 + $0x78] ss:$12 sps:$4 sm:$0xff]  }
  0x43   : > { %400 = vmatprep.mubr.bf16.mxu0 %v2732_v6  ;;  %702 = vmatprep.subr.bf16.mxu1 %v2314_v4  ;;  %v2327_v9 = vld [vmem:[#allocation8 + $0x7c] ss:$12 sps:$4 sm:$0xff]   ;;  %v1931_v13 = vld [vmem:[%s280_s14 + $0x18] sm:$0xff]   ;;  %v1932_v14 = vld [vmem:[#allocation5 + $0x4] ss:$12 sps:$4 sm:$0xff]   ;;  %v2734_v29 = vmov 0.0  }
  0x44   : > { %v1929_v12 = vld [vmem:[%s280_s14 + $0x10] sm:$0xff]   ;;  %382 = vmatprep.subr.bf16.mxu0 %v1932_v14  ;;  %v2351_v19 = vld [vmem:[#allocation8 + $0x34] ss:$12 sps:$4 sm:$0xff]   ;;  %v2356_v20 = vld [vmem:[#allocation8 + $0x30] ss:$12 sps:$4 sm:$0xff]   ;;  %vm2173_vm1 = vmmov 0  }
  0x45   : > { %1733 = vmatmul.mubr.msk.bf16.vlgmr.msra.gmra.mxu1 %vm355_vm0, %v1914_v3  ;;  %v1936_v15 = vld [vmem:[#allocation5] ss:$12 sps:$4 sm:$0xff]   ;;  %v2338_v16 = vld [vmem:[#allocation8 + $0x60] ss:$12 sps:$4 sm:$0xff]   ;;  %v2363_v22 = vld [vmem:[#allocation8 + $0x18] ss:$12 sps:$4 sm:$0xff]  }
  0x46   : > { %703 = vmatpush1.bf16.msra.mxu1 %v2316_v5  ;;  %1736 = vmatprep.mubr.msk.bf16.mxu1 %vm355_vm0, %v1929_v12  ;;  %v2341_v17 = vld [vmem:[#allocation8 + $0x4c] ss:$12 sps:$4 sm:$0xff]   ;;  %v2347_v18 = vld [vmem:[#allocation8 + $0x48] ss:$12 sps:$4 sm:$0xff]   ;;  %v2365_v23 = vld [vmem:[#allocation8 + $0x4] ss:$12 sps:$4 sm:$0xff]  }
  0x47   : > { %704 = vmatprep.subr.bf16.mxu1 %v2320_v7  ;;  %383 = vmatpush1.bf16.msra.mxu0 %v1936_v15  ;;  %v2360_v21 = vld [vmem:[#allocation8 + $0x1c] ss:$12 sps:$4 sm:$0xff]   ;;  %v2372_v24 = vld [vmem:[#allocation8] ss:$12 sps:$4 sm:$0xff]   ;;  %v2394_v30 = vld [vmem:[#allocation8 + $0x98] ss:$12 sps:$4 sm:$0xff]  }
  0x48   : > { %847 = vmatprep.subr.bf16.mxu0 %v2314_v4  ;;  %v2376_v25 = vld [vmem:[#allocation2] sm:$0xff]  ;;  %v2378_v26 = vld [vmem:[#allocation2 + $0x8] sm:$0xff]  ;;  %v2410_v32 = vld [vmem:[#allocation8 + $0x68] ss:$12 sps:$4 sm:$0xff]   ;;  %v305_v38 = vshrl.u32 %v304_v37, 7  ;;  %s1656_s10 = sshll.u32 %s2233_s25, 10 }
  0x49   : > { %v573_v27 = vpack.c.bf16 %v2378_v26, %v2376_v25  ;;  %v2387_v28 = vld [vmem:[#allocation8 + $0xb0] ss:$12 sps:$4 sm:$0xff]   ;;  %v2403_v31 = vld [vmem:[#allocation8 + $0x80] ss:$12 sps:$4 sm:$0xff]   ;;  %v2420_v34 = vld [vmem:[#allocation8 + $0x38] ss:$12 sps:$4 sm:$0xff]   ;;  %s2676_s13 = scalar_lea.hbm %s2730_s6, %s1656_s10 }
  0x4a   : > { %705 = vmatpush1.bf16.msra.mxu1 %v2324_v8  ;;  %1574 = vmatmul.mubr.msk.bf16.vlgmr.msra.gmra.mxu0 %vm355_vm0, %v1913_v2  ;;  %v2416_v33 = vld [vmem:[#allocation8 + $0x50] ss:$12 sps:$4 sm:$0xff]   ;;  %v2424_v35 = vld [vmem:[#allocation8 + $0x20] ss:$12 sps:$4 sm:$0xff]   ;;  %v2428_v36 = vld [vmem:[#allocation8 + $0x8] ss:$12 sps:$4 sm:$0xff]  }
  0x4b   : > { %706 = vmatprep.subr.bf16.mxu1 %v2327_v9  ;;  %848 = vmatpush1.bf16.msra.mxu0 %v2316_v5  ;;  %v314_v39 = vsub.s32 2, %v305_v38  ;;  %v302_v40 = vld [vmem:[%s2726_s2] sm:$0x7]  ;;  %v306_v61 = vsub.s32 0, %v305_v38  ;;  %v310_v1 = vsub.s32 1, %v305_v38  ;;  %s1468_s9 = sshll.u32 %s2309_s15, 4  ;;  %s2678_s9 = int_to_ptr.vmem [resolvable:$true] %s1468_s9 }
  0x4c   : > { %410 = vmatprep.mubr.bf16.mxu0 %v2732_v6  ;;  %849 = vmatprep.subr.bf16.mxu0 %v2320_v7  ;;  %s2684_s25 = scalar_lea.sflag [#allocation7], %s273_s29  ;;  %s2096_s14 = scalar_lea.vmem %s2678_s9, 1024 }
  0x4d   : > { %1737 = vmatmul.mubr.msk.bf16.gmra.mxu1 %vm355_vm0, %v1931_v13  ;;  %v2454_v41 = vrot.slane %v302_v40, %v314_v39  ;;  %v2484_v0 = vrot.slane %v302_v40, %v306_v61  ;;  %p2097_p13 = scmp.ne.s32.totalorder %s2678_s9, %s2096_s14  ;;  %s2174_s16 = smov [#allocation10]  }
  0x4e   : > { %707 = vmatpush1.bf16.msra.mxu1 %v2329_v10  ;;  %734 = vmatprep.mubr.bf16.mxu1 %v2732_v6  ;;  %s2100_s17 = sshll.u32 %s2174_s16, 4  ;;  %s2101_s17 = int_to_ptr.vmem [resolvable:$false] %s2100_s17 }
  0x4f   : > { %708 = vmatprep.subr.bf16.mxu1 %v2331_v11  ;;  %850 = vmatpush1.bf16.msra.mxu0 %v2324_v8  ;;  %p2098_p8 = pnand %p2097_p13, %p2250_p5  ;;  %s2102_s18 = scalar_lea.vmem %s2101_s17, 2048 }
  0x50   : > { %851 = vmatprep.subr.bf16.mxu0 %v2327_v9  ;;  %p2103_p1 = scmp.lt.s32.totalorder %s2678_s9, %s2101_s17  ;;  %p2104_p2 = scmp.lt.s32.totalorder %s2102_s18, %s2096_s14 }
  0x51   : > { %p2099_p12 = pneg %p2098_p8 }
  0x52   : > { %709 = vmatpush1.bf16.msra.mxu1 %v2338_v16  ;;  %1575 = vmatmul.mubr.msk.bf16.gmra.mxu0 %vm355_vm0, %v1914_v3  ;;  %p2105_p4 = por %p2104_p2, %p2103_p1 }
  0x53   : > { %710 = vmatprep.subr.bf16.mxu1 %v2341_v17  ;;  %852 = vmatpush1.bf16.msra.mxu0 %v2329_v10 }
  0x54   : > { %420 = vmatprep.mubr.bf16.mxu0 %v2732_v6  ;;  %853 = vmatprep.subr.bf16.mxu0 %v2331_v11  ;;  %p2106_p3 = pnand %p2105_p4, %p2099_p12 }
  0x56   : > { %711 = vmatpush1.bf16.msra.mxu1 %v2347_v18 }
  0x57   : > { %712 = vmatprep.subr.bf16.mxu1 %v2351_v19  ;;  %854 = vmatpush1.bf16.msra.mxu0 %v2338_v16 }
  0x58   : > { %855 = vmatprep.subr.bf16.mxu0 %v2341_v17 }
  0x5a   : > { %713 = vmatpush1.bf16.msra.mxu1 %v2356_v20  ;;  %1576 = vmatmul.mubr.msk.bf16.gmra.mxu0 %vm355_vm0, %v1929_v12 }
  0x5b   : > { %714 = vmatprep.subr.bf16.mxu1 %v2360_v21  ;;  %856 = vmatpush1.bf16.msra.mxu0 %v2347_v18 }
  0x5c   : > { %430 = vmatprep.mubr.bf16.mxu0 %v2732_v6  ;;  %857 = vmatprep.subr.bf16.mxu0 %v2351_v19 }
  0x5e   : > { %715 = vmatpush1.bf16.msra.mxu1 %v2363_v22 }
  0x5f   : > { %716 = vmatprep.subr.bf16.mxu1 %v2365_v23  ;;  %858 = vmatpush1.bf16.msra.mxu0 %v2356_v20 }
  0x60   : > { %859 = vmatprep.subr.bf16.mxu0 %v2360_v21 }
  0x62   : > { %717 = vmatpush1.bf16.msra.mxu1 %v2372_v24  ;;  %1577 = vmatmul.mubr.msk.bf16.gmra.mxu0 %vm355_vm0, %v1931_v13  ;;  %v2489_v13 = vrot.slane %v302_v40, %v310_v1 }
  0x63   : > { %1740 = vmatprep.subr.bf16.mxu1 %v2734_v29  ;;  %879 = vmatprep.mubr.bf16.mxu0 %v2732_v6 }
  0x64   : > { %860 = vmatpush1.bf16.msra.mxu0 %v2363_v22 }
  0x65   : > { %735 = vmatmul.mubr.bf16.vlgmr.msra.gmra.mxu1 %v573_v27  ;;  %861 = vmatprep.subr.bf16.mxu0 %v2365_v23 }
  0x66   : > { %1741 = vmatpush3.bf16.msra.mxu1 %v2387_v28  ;;  %1756 = vmatprep.mubr.msk.bf16.mxu1 %vm2173_vm1, %v2734_v29 }
  0x67   : > { %1742 = vmatprep.subr.bf16.mxu1 %v2734_v29 }
  0x68   : > { %862 = vmatpush1.bf16.msra.mxu0 %v2372_v24 }
  0x69   : > { %993 = vmatprep.subr.bf16.mxu0 %v2314_v4 }
  0x6a   : > { %1743 = vmatpush3.bf16.msra.mxu1 %v2394_v30 }
  0x6b   : > { %1744 = vmatprep.subr.bf16.mxu1 %v2734_v29 }
  0x6e   : > { %1745 = vmatpush3.bf16.msra.mxu1 %v2403_v31 }
  0x6f   : > { %1746 = vmatprep.subr.bf16.mxu1 %v2734_v29 }
  0x72   : > { %1747 = vmatpush3.bf16.msra.mxu1 %v2410_v32 }
  0x73   : > { %1748 = vmatprep.subr.bf16.mxu1 %v2734_v29 }
  0x76   : > { %1749 = vmatpush3.bf16.msra.mxu1 %v2416_v33 }
  0x77   : > { %1750 = vmatprep.subr.bf16.mxu1 %v2734_v29 }
  0x7a   : > { %1751 = vmatpush3.bf16.msra.mxu1 %v2420_v34 }
  0x7b   : > { %1752 = vmatprep.subr.bf16.mxu1 %v2734_v29 }
  0x7e   : > { %1753 = vmatpush3.bf16.msra.mxu1 %v2424_v35 }
  0x7f   : > { %1754 = vmatprep.subr.bf16.mxu1 %v2734_v29 }
  0x82   : > { %1755 = vmatpush3.bf16.msra.mxu1 %v2428_v36 }
  0x83   : > { %1760 = vmatprep.subr.bf16.mxu1 %v2734_v29 }
  0x85   : > { %1757 = vmatmul.mubr.bf16.vlgmr.msra.gmra.mxu1 %v573_v27 }
  0x86   : > { %1761 = vmatpush3.bf16.msra.mxu1 %v2387_v28  ;;  %1776 = vmatprep.mubr.msk.bf16.mxu1 %vm2173_vm1, %v2734_v29 }
  0x87   : > { %1762 = vmatprep.subr.bf16.mxu1 %v2734_v29 }
  0x8a   : > { %1763 = vmatpush3.bf16.msra.mxu1 %v2394_v30 }
  0x8b   : > { %1764 = vmatprep.subr.bf16.mxu1 %v2734_v29 }
  0x8e   : > { %1765 = vmatpush3.bf16.msra.mxu1 %v2403_v31 }
  0x8f   : > { %1766 = vmatprep.subr.bf16.mxu1 %v2734_v29 }
  0x92   : > { %1767 = vmatpush3.bf16.msra.mxu1 %v2410_v32 }
  0x93   : > { %1768 = vmatprep.subr.bf16.mxu1 %v2734_v29 }
  0x96   : > { %1769 = vmatpush3.bf16.msra.mxu1 %v2416_v33 }
  0x97   : > { %1770 = vmatprep.subr.bf16.mxu1 %v2734_v29 }
  0x9a   : > { %1771 = vmatpush3.bf16.msra.mxu1 %v2420_v34 }
  0x9b   : > { %1772 = vmatprep.subr.bf16.mxu1 %v2734_v29 }
  0x9e   : > { %1773 = vmatpush3.bf16.msra.mxu1 %v2424_v35 }
  0x9f   : > { %1774 = vmatprep.subr.bf16.mxu1 %v2734_v29 }
  0xa2   : > { %1775 = vmatpush3.bf16.msra.mxu1 %v2428_v36 }
  0xa3   : > { %1780 = vmatprep.subr.bf16.mxu1 %v2734_v29 }
 0x105   : > { %v1734_v42 = vpop.f32.mrf.mxu1 }
 0x106   : > { %v2457_v43 = vadd.f32 %v1734_v42, %v2454_v41 }
 0x107   : > { %v2459_v44 = vpop.f32.mrf.mxu1 }
 0x109   : > { %v1735_v45 = vpop.f32.mrf.mxu1 }
 0x10a   : > { %v2462_v46 = vadd.f32 %v1735_v45, %v2454_v41  ;;  %v402_v53 = vpop.f32.mrf.mxu0 }
 0x10b   : > { %v2464_v47 = vpop.f32.mrf.mxu1  ;;  %v403_v12 = vadd.f32 %v402_v53, %v2484_v0 }
 0x10c   : > { %v404_v56 = vpop.f32.mrf.mxu0 }
 0x10d   : > { %v1738_v48 = vpop.f32.mrf.mxu1 }
 0x10e   : > { %v2467_v49 = vadd.f32 %v1738_v48, %v2454_v41  ;;  %v406_v58 = vpop.f32.mrf.mxu0 }
 0x10f   : > { %v491_v50 = vpop.f32.mrf.mxu1 }
 0x110   : > { %2745 = vst [vmem:[#allocation14_spill] sm:$0xff] %v2467_v49  ;;  %v2470_v51 = vadd.f32 %v491_v50, %v2454_v41  ;;  %v408_v59 = vpop.f32.mrf.mxu0  ;;  %v407_v50 = vadd.f32 %v406_v58, %v2484_v0 }
 0x111   : > { %v1739_v52 = vpop.f32.mrf.mxu1  ;;  %v409_v58 = vadd.f32 %v408_v59, %v2489_v13 }
 0x112   : > { %v2473_v54 = vadd.f32 %v1739_v52, %v2454_v41  ;;  %v2478_v60 = vpop.f32.mrf.mxu0 }
 0x113   : > { %v494_v55 = vpop.f32.mrf.mxu1 }
 0x114   : > { %2746 = vst [vmem:[#allocation15_spill] sm:$0xff] %v2473_v54  ;;  %v2476_v57 = vadd.f32 %v494_v55, %v2454_v41  ;;  %v2480_v62 = vpop.f32.mrf.mxu0 }
 0x116   : > { %v2482_v63 = vpop.f32.mrf.mxu0 }
 0x118   : > { %v2486_v2 = vpop.f32.mrf.mxu0 }
 0x11a   : > { %v422_v3 = vpop.f32.mrf.mxu0 }
 0x11b   : > { %v2492_v14 = vadd.f32 %v422_v3, %v2484_v0 }
 0x11c   : > { %v424_v15 = vpop.f32.mrf.mxu0 }
 0x11d   : > { %v2495_v27 = vadd.f32 %v424_v15, %v2489_v13 }
 0x11e   : > { %v426_v39 = vpop.f32.mrf.mxu0 }
 0x11f   : > { %v2498_v45 = vadd.f32 %v426_v39, %v2484_v0 }
 0x120   : > { %v428_v48 = vpop.f32.mrf.mxu0 }
 0x121   : > { %v2502_v40 = vadd.f32 %v428_v48, %v2489_v13 }
 0x122   : > { %v432_v55 = vpop.f32.mrf.mxu0 }
 0x123   : > { %v2505_v1 = vadd.f32 %v432_v55, %v2484_v0 }
 0x124   : > { %v434_v3 = vpop.f32.mrf.mxu0 }
 0x125   : > { %v736_v37 = vpop.f32.mrf.mxu1  ;;  %v2509_v39 = vadd.f32 %v434_v3, %v2489_v13 }
 0x126   : > { %v786_v42 = vadd.f32 %v736_v37, %v403_v12  ;;  %v405_v12 = vadd.f32 %v404_v56, %v2489_v13 }
 0x127   : > { %v738_v38 = vpop.f32.mrf.mxu1 }
 0x128   : > { %v1606_v52 = vmul.f32 -1.442695, %v786_v42  ;;  %v436_v42 = vpop.f32.mrf.mxu0  ;;  %v800_v48 = vadd.f32 %v738_v38, %v405_v12 }
 0x129   : > { %v740_v53 = vpop.f32.mrf.mxu1  ;;  %v2513_v6 = vadd.f32 %v436_v42, %v2484_v0 }
 0x12a   : > { %1964 = vpow2.f32 %v1606_v52  ;;  %v787_v61 = vadd.f32 %v740_v53, %v407_v50  ;;  %v1608_v52 = vmul.f32 -1.442695, %v800_v48 }
 0x12b   : > { %v742_v37 = vpop.f32.mrf.mxu1 }
 0x12c   : > { %v1607_v15 = vmul.f32 -1.442695, %v787_v61  ;;  %v801_v50 = vadd.f32 %v742_v37, %v409_v58  ;;  %v476_v37 = vadd.f32 %v2459_v44, %v2454_v41 }
 0x12e   : > { %1966 = vpow2.f32 %v1607_v15  ;;  %v1609_v53 = vmul.f32 -1.442695, %v801_v50 }
 0x12f   : > { %1968 = vpow2.f32 %v1608_v52 }
 0x130   : > { %1970 = vpow2.f32 %v1609_v53 }
 0x137   : > { %v1965_v55 = vpop.eup %1964 }
 0x138   : > { %v794_v56 = vadd.f32 1.0, %v1965_v55 }
 0x13a   : > { %1972 = vrcp.f32 %v794_v56 }
 0x13b   : > { %v1967_v61 = vpop.eup %1966 }
 0x13c   : > { %v795_v29 = vadd.f32 1.0, %v1967_v61  ;;  %v1969_v3 = vpop.eup %1968 }
 0x13d   : > { %v1971_v54 = vpop.eup %1970  ;;  %v808_v49 = vadd.f32 1.0, %v1969_v3 }
 0x13e   : > { %1974 = vrcp.f32 %v795_v29  ;;  %v809_v12 = vadd.f32 1.0, %v1971_v54  ;;  %v479_v29 = vadd.f32 %v2464_v47, %v2454_v41  ;;  %v2747_v47 = vmov 0.0  }
 0x13f   : > { %1976 = vrcp.f32 %v808_v49 }
 0x140   : > { %1978 = vrcp.f32 %v809_v12 }
 0x145   : > { %v779_v59 = vpop.f32.mrf.mxu1 }
 0x147   : > { %v1973_v38 = vpop.eup %1972  ;;  %v1758_v15 = vpop.f32.mrf.mxu1 }
 0x148   : > { %v814_v58 = vmul.f32 %v1973_v38, %v779_v59 }
 0x149   : > { %v782_v42 = vpop.f32.mrf.mxu1 }
 0x14a   : > { %v816_v48 = vadd.f32 %v814_v58, %v476_v37 }
 0x14b   : > { %v1975_v50 = vpop.eup %1974  ;;  %v1759_v52 = vpop.f32.mrf.mxu1 }
 0x14c   : > { %1980 = vtanh.f32 %v816_v48  ;;  %v815_v53 = vmul.f32 %v1975_v50, %v782_v42  ;;  %v1977_v56 = vpop.eup %1976  ;;  %v413_v42 = vadd.f32 %v2478_v60, %v2484_v0 }
 0x14d   : > { %v1979_v54 = vpop.eup %1978  ;;  %v820_v3 = vsub.f32 1.0, %v1977_v56  ;;  %v824_v49 = vmul.f32 %v1977_v56, %v2376_v25  ;;  %v2748_v25 = vmov 0  }
 0x14e   : > { %v817_v55 = vadd.f32 %v815_v53, %v479_v29  ;;  %v821_v15 = vsub.f32 1.0, %v1979_v54  ;;  %v825_v12 = vmul.f32 %v1979_v54, %v2378_v26  ;;  %v2562_v26 = vpop.f32.mrf.mxu0 }
 0x150   : > { %1982 = vtanh.f32 %v817_v55  ;;  %v417_v55 = vadd.f32 %v2482_v63, %v2484_v0 }
 0x159   : > { %v1981_v61 = vpop.eup %1980 }
 0x15a   : > { %v822_v44 = vmul.f32 %v1981_v61, %v820_v3 }
 0x15c   : > { %v2521_v37 = vadd.f32 %v824_v49, %v822_v44 }
 0x15d   : > { %v1983_v59 = vpop.eup %1982 }
 0x15e   : > { %v823_v38 = vmul.f32 %v1983_v59, %v821_v15 }
 0x160   : > { %v2523_v58 = vadd.f32 %v825_v12, %v823_v38  ;;  %v419_v38 = vadd.f32 %v2486_v2, %v2489_v13 }
 0x162   : > { %v828_v41 = vpack.c.bf16 %v2523_v58, %v2521_v37 }
 0x164   : > { %1661 = vst [vmem:[#allocation4] sm:$0xff] %v828_v41   ;;  %880 = vmatmul.mubr.bf16.vlgmr.msra.gmra.mxu0 %v828_v41  ;;  %1777 = vmatmul.mubr.bf16.vlgmr.msra.gmra.mxu1 %v828_v41 }
 0x165   : > { %994 = vmatpush1.bf16.msra.mxu0 %v2316_v5  ;;  %1781 = vmatpush3.bf16.msra.mxu1 %v2387_v28 }
 0x166   : > { %995 = vmatprep.subr.bf16.mxu0 %v2320_v7  ;;  %1782 = vmatprep.subr.bf16.mxu1 %v2747_v47 }
 0x167   : > { %1025 = vmatprep.mubr.bf16.mxu0 %v2748_v25  ;;  %1796 = vmatprep.mubr.msk.bf16.mxu1 %vm2173_vm1, %v2747_v47 }
 0x169   : > { %996 = vmatpush1.bf16.msra.mxu0 %v2324_v8  ;;  %1783 = vmatpush3.bf16.msra.mxu1 %v2394_v30 }
 0x16a   : > { %997 = vmatprep.subr.bf16.mxu0 %v2327_v9  ;;  %1784 = vmatprep.subr.bf16.mxu1 %v2747_v47 }
 0x16d   : > { %998 = vmatpush1.bf16.msra.mxu0 %v2329_v10  ;;  %1785 = vmatpush3.bf16.msra.mxu1 %v2403_v31 }
 0x16e   : > { %999 = vmatprep.subr.bf16.mxu0 %v2331_v11  ;;  %1786 = vmatprep.subr.bf16.mxu1 %v2747_v47 }
 0x171   : > { %1000 = vmatpush1.bf16.msra.mxu0 %v2338_v16  ;;  %1787 = vmatpush3.bf16.msra.mxu1 %v2410_v32 }
 0x172   : > { %1001 = vmatprep.subr.bf16.mxu0 %v2341_v17  ;;  %1788 = vmatprep.subr.bf16.mxu1 %v2747_v47 }
 0x175   : > { %1002 = vmatpush1.bf16.msra.mxu0 %v2347_v18  ;;  %1789 = vmatpush3.bf16.msra.mxu1 %v2416_v33 }
 0x176   : > { %1003 = vmatprep.subr.bf16.mxu0 %v2351_v19  ;;  %1790 = vmatprep.subr.bf16.mxu1 %v2747_v47 }
 0x179   : > { %1004 = vmatpush1.bf16.msra.mxu0 %v2356_v20  ;;  %1791 = vmatpush3.bf16.msra.mxu1 %v2420_v34 }
 0x17a   : > { %1005 = vmatprep.subr.bf16.mxu0 %v2360_v21  ;;  %1792 = vmatprep.subr.bf16.mxu1 %v2747_v47 }
 0x17d   : > { %1006 = vmatpush1.bf16.msra.mxu0 %v2363_v22  ;;  %1793 = vmatpush3.bf16.msra.mxu1 %v2424_v35 }
 0x17e   : > { %1007 = vmatprep.subr.bf16.mxu0 %v2365_v23  ;;  %1794 = vmatprep.subr.bf16.mxu1 %v2747_v47 }
 0x181   : > { %1008 = vmatpush1.bf16.msra.mxu0 %v2372_v24  ;;  %1795 = vmatpush3.bf16.msra.mxu1 %v2428_v36 }
 0x182   : > { %1139 = vmatprep.subr.bf16.mxu0 %v2314_v4  ;;  %1800 = vmatprep.subr.bf16.mxu1 %v2747_v47  ;;  %v415_v4 = vadd.f32 %v2480_v62, %v2489_v13 }
 0x224   : > { %v881_v48 = vpop.f32.mrf.mxu0  ;;  %v924_v50 = vpop.f32.mrf.mxu1 }
 0x225   : > { %v931_v52 = vadd.f32 %v881_v48, %v413_v42 }
 0x226   : > { %v883_v29 = vpop.f32.mrf.mxu0  ;;  %v1778_v53 = vpop.f32.mrf.mxu1 }
 0x227   : > { %v1612_v56 = vmul.f32 -1.442695, %v931_v52  ;;  %v945_v44 = vadd.f32 %v883_v29, %v415_v4 }
 0x228   : > { %v885_v54 = vpop.f32.mrf.mxu0  ;;  %v927_v61 = vpop.f32.mrf.mxu1 }
 0x229   : > { %1984 = vpow2.f32 %v1612_v56  ;;  %v932_v3 = vadd.f32 %v885_v54, %v417_v55  ;;  %v1614_v12 = vmul.f32 -1.442695, %v945_v44 }
 0x22a   : > { %v1779_v15 = vpop.f32.mrf.mxu1  ;;  %v887_v60 = vpop.f32.mrf.mxu0 }
 0x22b   : > { %v1613_v59 = vmul.f32 -1.442695, %v932_v3  ;;  %v946_v49 = vadd.f32 %v887_v60, %v419_v38 }
 0x22d   : > { %1986 = vpow2.f32 %v1613_v59  ;;  %v1615_v41 = vmul.f32 -1.442695, %v946_v49 }
 0x22e   : > { %1988 = vpow2.f32 %v1614_v12 }
 0x22f   : > { %1990 = vpow2.f32 %v1615_v41 }
 0x236   : > { %v1985_v63 = vpop.eup %1984 }
 0x237   : > { %v939_v0 = vadd.f32 1.0, %v1985_v63 }
 0x239   : > { %1992 = vrcp.f32 %v939_v0 }
 0x23a   : > { %v1987_v42 = vpop.eup %1986 }
 0x23b   : > { %v940_v62 = vadd.f32 1.0, %v1987_v42  ;;  %v1989_v48 = vpop.eup %1988 }
 0x23c   : > { %v1991_v52 = vpop.eup %1990  ;;  %v953_v29 = vadd.f32 1.0, %v1989_v48 }
 0x23d   : > { %1994 = vrcp.f32 %v940_v62  ;;  %v954_v55 = vadd.f32 1.0, %v1991_v52 }
 0x23e   : > { %1996 = vrcp.f32 %v953_v29 }
 0x23f   : > { %1998 = vrcp.f32 %v954_v55 }
 0x246   : > { %v1993_v53 = vpop.eup %1992 }
 0x247   : > { %v959_v56 = vmul.f32 %v1993_v53, %v924_v50 }
 0x249   : > { %v961_v2 = vadd.f32 %v959_v56, %v2457_v43 }
 0x24a   : > { %v1995_v54 = vpop.eup %1994 }
 0x24b   : > { %2000 = vtanh.f32 %v961_v2  ;;  %v960_v4 = vmul.f32 %v1995_v54, %v927_v61  ;;  %v1997_v15 = vpop.eup %1996 }
 0x24c   : > { %v1999_v44 = vpop.eup %1998  ;;  %v965_v59 = vsub.f32 1.0, %v1997_v15  ;;  %v969_v49 = vmul.f32 %v1997_v15, %v2521_v37  ;;  %v1955_v15 = vld [vmem:[%s2728_s4 + $0x28] sm:$0xff]  }
 0x24d   : > { %v962_v3 = vadd.f32 %v960_v4, %v2462_v46  ;;  %v966_v12 = vsub.f32 1.0, %v1999_v44  ;;  %v970_v43 = vmul.f32 %v1999_v44, %v2523_v58  ;;  %v1954_v4 = vld [vmem:[%s2728_s4 + $0x30] sm:$0xff]   ;;  %v1956_v44 = vld [vmem:[%s2728_s4 + $0x20] sm:$0xff]  }
 0x24f   : > { %2002 = vtanh.f32 %v962_v3  ;;  %v1953_v3 = vld [vmem:[#allocation4] sm:$0xff]  }
 0x258   : > { %v2001_v60 = vpop.eup %2000 }
 0x259   : > { %v967_v38 = vmul.f32 %v2001_v60, %v965_v59  ;;  %v1957_v59 = vld [vmem:[%s2728_s4 + $0x18] sm:$0xff]   ;;  %v1958_v60 = vld [vmem:[%s2728_s4 + $0x10] sm:$0xff]  }
 0x25b   : > { %v2575_v41 = vadd.f32 %v969_v49, %v967_v38  ;;  %v1959_v38 = vld [vmem:[%s2728_s4 + $0x8] sm:$0xff]   ;;  %v1960_v49 = vld [vmem:[%s2728_s4] sm:$0xff]  }
 0x25c   : > { %v2003_v50 = vpop.eup %2002 }
 0x25d   : > { %v968_v63 = vmul.f32 %v2003_v50, %v966_v12 }
 0x25f   : > { %v2578_v0 = vadd.f32 %v970_v43, %v968_v63 }
 0x261   : > { %v973_v46 = vpack.c.bf16 %v2578_v0, %v2575_v41 }
 0x263   : > { %1666 = vst [vmem:[#allocation4 + $0x8] sm:$0xff] %v973_v46   ;;  %1026 = vmatmul.mubr.bf16.vlgmr.msra.gmra.mxu0 %v973_v46  ;;  %1797 = vmatmul.mubr.bf16.vlgmr.msra.gmra.mxu1 %v973_v46 }
 0x264   : > { %1140 = vmatpush1.bf16.msra.mxu0 %v2316_v5  ;;  %1801 = vmatpush3.bf16.msra.mxu1 %v2387_v28  ;;  %v1952_v5 = vld [vmem:[%s2728_s4 + $0x38] sm:$0xff]  }
 0x265   : > { %1141 = vmatprep.subr.bf16.mxu0 %v2320_v7  ;;  %1802 = vmatprep.subr.bf16.mxu1 %v2747_v47 }
 0x266   : > { %1171 = vmatprep.mubr.bf16.mxu0 %v2748_v25  ;;  %1816 = vmatprep.mubr.msk.bf16.mxu1 %vm2173_vm1, %v2747_v47 }
 0x268   : > { %1142 = vmatpush1.bf16.msra.mxu0 %v2324_v8  ;;  %1803 = vmatpush3.bf16.msra.mxu1 %v2394_v30 }
 0x269   : > { %1143 = vmatprep.subr.bf16.mxu0 %v2327_v9  ;;  %1804 = vmatprep.subr.bf16.mxu1 %v2747_v47 }
 0x26a   : > { %v1961_v12 = vld [vmem:[#allocation4 + $0x8] sm:$0xff]  }
 0x26c   : > { %1144 = vmatpush1.bf16.msra.mxu0 %v2329_v10  ;;  %1805 = vmatpush3.bf16.msra.mxu1 %v2403_v31 }
 0x26d   : > { %1145 = vmatprep.subr.bf16.mxu0 %v2331_v11  ;;  %1806 = vmatprep.subr.bf16.mxu1 %v2747_v47 }
 0x270   : > { %1146 = vmatpush1.bf16.msra.mxu0 %v2338_v16  ;;  %1807 = vmatpush3.bf16.msra.mxu1 %v2410_v32 }
 0x271   : > { %1147 = vmatprep.subr.bf16.mxu0 %v2341_v17  ;;  %1808 = vmatprep.subr.bf16.mxu1 %v2747_v47 }
 0x274   : > { %1148 = vmatpush1.bf16.msra.mxu0 %v2347_v18  ;;  %1809 = vmatpush3.bf16.msra.mxu1 %v2416_v33 }
 0x275   : > { %1149 = vmatprep.subr.bf16.mxu0 %v2351_v19  ;;  %1810 = vmatprep.subr.bf16.mxu1 %v2747_v47 }
 0x278   : > { %1150 = vmatpush1.bf16.msra.mxu0 %v2356_v20  ;;  %1811 = vmatpush3.bf16.msra.mxu1 %v2420_v34 }
 0x279   : > { %1151 = vmatprep.subr.bf16.mxu0 %v2360_v21  ;;  %1812 = vmatprep.subr.bf16.mxu1 %v2747_v47 }
 0x27c   : > { %1152 = vmatpush1.bf16.msra.mxu0 %v2363_v22  ;;  %1813 = vmatpush3.bf16.msra.mxu1 %v2424_v35 }
 0x27d   : > { %1153 = vmatprep.subr.bf16.mxu0 %v2365_v23  ;;  %1814 = vmatprep.subr.bf16.mxu1 %v2747_v47 }
 0x280   : > { %1154 = vmatpush1.bf16.msra.mxu0 %v2372_v24  ;;  %1815 = vmatpush3.bf16.msra.mxu1 %v2428_v36 }
 0x281   : > { %1820 = vmatprep.subr.bf16.mxu0 %v1952_v5 }
 0x323   : > { %v1027_v7 = vpop.f32.mrf.mxu0  ;;  %v1070_v8 = vpop.f32.mrf.mxu1 }
 0x324   : > { %v1077_v9 = vadd.f32 %v1027_v7, %v2492_v14 }
 0x325   : > { %v1029_v10 = vpop.f32.mrf.mxu0  ;;  %v1798_v11 = vpop.f32.mrf.mxu1 }
 0x326   : > { %v1618_v16 = vmul.f32 -1.442695, %v1077_v9  ;;  %v1091_v21 = vadd.f32 %v1029_v10, %v2495_v27 }
 0x327   : > { %v1031_v17 = vpop.f32.mrf.mxu0  ;;  %v1073_v18 = vpop.f32.mrf.mxu1 }
 0x328   : > { %2004 = vpow2.f32 %v1618_v16  ;;  %v1078_v19 = vadd.f32 %v1031_v17, %v2498_v45  ;;  %v1620_v28 = vmul.f32 -1.442695, %v1091_v21 }
 0x329   : > { %v1799_v20 = vpop.f32.mrf.mxu1  ;;  %v1033_v23 = vpop.f32.mrf.mxu0 }
 0x32a   : > { %v1619_v22 = vmul.f32 -1.442695, %v1078_v19  ;;  %v1092_v24 = vadd.f32 %v1033_v23, %v2502_v40 }
 0x32c   : > { %2006 = vpow2.f32 %v1619_v22  ;;  %v1621_v30 = vmul.f32 -1.442695, %v1092_v24  ;;  %v1630_v24 = vld [vmem:[%s2729_s5] ss:$0 sm:$0xff] }
 0x32d   : > { %2008 = vpow2.f32 %v1620_v28 }
 0x32e   : > { %2010 = vpow2.f32 %v1621_v30 }
 0x335   : > { %v2005_v31 = vpop.eup %2004 }
 0x336   : > { %v1085_v32 = vadd.f32 1.0, %v2005_v31 }
 0x338   : > { %2012 = vrcp.f32 %v1085_v32 }
 0x339   : > { %v2007_v33 = vpop.eup %2006 }
 0x33a   : > { %v1086_v34 = vadd.f32 1.0, %v2007_v33  ;;  %v2009_v35 = vpop.eup %2008 }
 0x33b   : > { %v2011_v36 = vpop.eup %2010  ;;  %v1099_v14 = vadd.f32 1.0, %v2009_v35 }
 0x33c   : > { %2014 = vrcp.f32 %v1086_v34  ;;  %v1100_v27 = vadd.f32 1.0, %v2011_v36 }
 0x33d   : > { %2016 = vrcp.f32 %v1099_v14  ;;  %v2749_v14 = vld [vmem:[#allocation14_spill] sm:$0xff] }
 0x33e   : > { %2018 = vrcp.f32 %v1100_v27 }
 0x345   : > { %v2013_v45 = vpop.eup %2012 }
 0x346   : > { %v1105_v37 = vmul.f32 %v2013_v45, %v1070_v8 }
 0x348   : > { %v1107_v58 = vadd.f32 %v1105_v37, %v2470_v51 }
 0x349   : > { %v2015_v40 = vpop.eup %2014 }
 0x34a   : > { %2020 = vtanh.f32 %v1107_v58  ;;  %v1106_v47 = vmul.f32 %v2015_v40, %v1073_v18  ;;  %v2017_v61 = vpop.eup %2016  ;;  %v439_v18 = vadd.f32 %v2562_v26, %v2489_v13 }
 0x34b   : > { %v2019_v42 = vpop.eup %2018  ;;  %v1111_v62 = vsub.f32 1.0, %v2017_v61  ;;  %v1115_v29 = vmul.f32 %v2017_v61, %v2575_v41 }
 0x34c   : > { %v1108_v25 = vadd.f32 %v1106_v47, %v2476_v57  ;;  %v1112_v53 = vsub.f32 1.0, %v2019_v42  ;;  %v1116_v51 = vmul.f32 %v2019_v42, %v2578_v0 }
 0x34e   : > { %2022 = vtanh.f32 %v1108_v25  ;;  %v2750_v25 = vld [vmem:[#allocation15_spill] sm:$0xff] }
 0x357   : > { %v2021_v48 = vpop.eup %2020 }
 0x358   : > { %v1113_v52 = vmul.f32 %v2021_v48, %v1111_v62 }
 0x35a   : > { %v2625_v55 = vadd.f32 %v1115_v29, %v1113_v52 }
 0x35b   : > { %v2023_v56 = vpop.eup %2022 }
 0x35c   : > { %v1114_v2 = vmul.f32 %v2023_v56, %v1112_v53 }
 0x35e   : > { %v2628_v54 = vadd.f32 %v1116_v51, %v1114_v2 }
 0x360   : > { %v1119_v57 = vpack.c.bf16 %v2628_v54, %v2625_v55 }
 0x362   : > { %1671 = vst [vmem:[#allocation4 + $0x10] sm:$0xff] %v1119_v57   ;;  %1172 = vmatmul.mubr.bf16.vlgmr.msra.gmra.mxu0 %v1119_v57  ;;  %1817 = vmatmul.mubr.bf16.vlgmr.msra.gmra.mxu1 %v1119_v57 }
 0x363   : > { %1821 = vmatpush3.bf16.msra.mxu0 %v1952_v5  ;;  %1836 = vmatprep.mubr.bf16.mxu0 %v1953_v3 }
 0x364   : > { %1822 = vmatprep.subr.bf16.mxu0 %v1954_v4 }
 0x367   : > { %1823 = vmatpush3.bf16.msra.mxu0 %v1954_v4 }
 0x368   : > { %1824 = vmatprep.subr.bf16.mxu0 %v1955_v15 }
 0x369   : > { %v1962_v41 = vld [vmem:[#allocation4 + $0x10] sm:$0xff]  }
 0x36b   : > { %1825 = vmatpush3.bf16.msra.mxu0 %v1955_v15 }
 0x36c   : > { %1826 = vmatprep.subr.bf16.mxu0 %v1956_v44 }
 0x36f   : > { %1827 = vmatpush3.bf16.msra.mxu0 %v1956_v44 }
 0x370   : > { %1828 = vmatprep.subr.bf16.mxu0 %v1957_v59 }
 0x373   : > { %1829 = vmatpush3.bf16.msra.mxu0 %v1957_v59 }
 0x374   : > { %1830 = vmatprep.subr.bf16.mxu0 %v1958_v60 }
 0x377   : > { %1831 = vmatpush3.bf16.msra.mxu0 %v1958_v60 }
 0x378   : > { %1832 = vmatprep.subr.bf16.mxu0 %v1959_v38 }
 0x37b   : > { %1833 = vmatpush3.bf16.msra.mxu0 %v1959_v38 }
 0x37c   : > { %1834 = vmatprep.subr.bf16.mxu0 %v1960_v49 }
 0x37f   : > { %1835 = vmatpush3.bf16.msra.mxu0 %v1960_v49 }
 0x382   : > { %1837 = vmatmul.mubr.bf16.vlgmr.msra.gmra.mxu0 %v1961_v12 }
 0x383   : > { %1840 = vmatprep.mubr.bf16.mxu0 %v1962_v41 }
 0x422   : > { %v1173_v50 = vpop.f32.mrf.mxu0  ;;  %v1216_v63 = vpop.f32.mrf.mxu1 }
 0x423   : > { %v1223_v43 = vadd.f32 %v1173_v50, %v2505_v1 }
 0x424   : > { %v1175_v0 = vpop.f32.mrf.mxu0  ;;  %v1818_v46 = vpop.f32.mrf.mxu1 }
 0x425   : > { %v1624_v5 = vmul.f32 -1.442695, %v1223_v43  ;;  %v1237_v11 = vadd.f32 %v1175_v0, %v2509_v39 }
 0x426   : > { %v1177_v7 = vpop.f32.mrf.mxu0  ;;  %v1219_v8 = vpop.f32.mrf.mxu1 }
 0x427   : > { %2024 = vpow2.f32 %v1624_v5  ;;  %v1224_v9 = vadd.f32 %v1177_v7, %v2513_v6  ;;  %v1626_v20 = vmul.f32 -1.442695, %v1237_v11 }
 0x428   : > { %v1819_v10 = vpop.f32.mrf.mxu1  ;;  %v1179_v17 = vpop.f32.mrf.mxu0 }
 0x429   : > { %v1625_v16 = vmul.f32 -1.442695, %v1224_v9  ;;  %v1238_v19 = vadd.f32 %v1179_v17, %v439_v18 }
 0x42b   : > { %2026 = vpow2.f32 %v1625_v16  ;;  %v1627_v1 = vmul.f32 -1.442695, %v1238_v19 }
 0x42c   : > { %2028 = vpow2.f32 %v1626_v20 }
 0x42d   : > { %2030 = vpow2.f32 %v1627_v1 }
 0x434   : > { %v2025_v21 = vpop.eup %2024 }
 0x435   : > { %v1231_v22 = vadd.f32 1.0, %v2025_v21 }
 0x437   : > { %2032 = vrcp.f32 %v1231_v22 }
 0x438   : > { %v2027_v23 = vpop.eup %2026 }
 0x439   : > { %v1232_v6 = vadd.f32 1.0, %v2027_v23  ;;  %v2029_v39 = vpop.eup %2028 }
 0x43a   : > { %v2031_v13 = vpop.eup %2030  ;;  %v1245_v26 = vadd.f32 1.0, %v2029_v39 }
 0x43b   : > { %2034 = vrcp.f32 %v1232_v6  ;;  %v1246_v32 = vadd.f32 1.0, %v2031_v13 }
 0x43c   : > { %2036 = vrcp.f32 %v1245_v26 }
 0x43d   : > { %2038 = vrcp.f32 %v1246_v32 }
 0x442   : > { %v1838_v28 = vpop.f32.mrf.mxu0 }
 0x443   : > { %v1424_v30 = vadd.f32 %v1838_v28, %v1630_v24 }
 0x444   : > { %v2033_v31 = vpop.eup %2032  ;;  %v1415_v33 = vpop.f32.mrf.mxu0 }
 0x445   : > { %v1251_v34 = vmul.f32 %v2033_v31, %v1216_v63  ;;  %1448 = vst [vmem:[%s2309_s15 + $0x10] sm:$0xff] %v1424_v30  ;;  %v1416_v35 = vadd.f32 %v1630_v24, %v1415_v33 }
 0x446   : > { %v1839_v36 = vpop.f32.mrf.mxu0 }
 0x447   : > { %v1253_v45 = vadd.f32 %v1251_v34, %v2749_v14  ;;  %1446 = vst [vmem:[%s2309_s15] sm:$0xff] %v1416_v35  ;;  %v1427_v27 = vadd.f32 %v1839_v36, %v1630_v24 }
 0x448   : > { %v2035_v37 = vpop.eup %2034  ;;  %v1418_v58 = vpop.f32.mrf.mxu0 }
 0x449   : > { %2040 = vtanh.f32 %v1253_v45  ;;  %v1252_v40 = vmul.f32 %v2035_v37, %v1219_v8  ;;  %1449 = vst [vmem:[%s2309_s15 + $0x18] sm:$0xff] %v1427_v27  ;;  %v1419_v47 = vadd.f32 %v1630_v24, %v1418_v58  ;;  %v2037_v42 = vpop.eup %2036 }
 0x44a   : > { %v2039_v62 = vpop.eup %2038  ;;  %v1257_v48 = vsub.f32 1.0, %v2037_v42  ;;  %v1261_v53 = vmul.f32 %v2037_v42, %v2625_v55 }
 0x44b   : > { %v1254_v61 = vadd.f32 %v1252_v40, %v2750_v25  ;;  %1447 = vst [vmem:[%s2309_s15 + $0x8] sm:$0xff] %v1419_v47  ;;  %v1258_v2 = vsub.f32 1.0, %v2039_v62  ;;  %v1262_v4 = vmul.f32 %v2039_v62, %v2628_v54 }
 0x44d   : > { %2042 = vtanh.f32 %v1254_v61 }
 0x456   : > { %v2041_v52 = vpop.eup %2040 }
 0x457   : > { %v1259_v29 = vmul.f32 %v2041_v52, %v1257_v48 }
 0x459   : > { %v1263_v56 = vadd.f32 %v1261_v53, %v1259_v29 }
 0x45a   : > { %v2043_v51 = vpop.eup %2042 }
 0x45b   : > { %1276 = vst [vmem:[#allocation2] sm:$0xff] %v1263_v56  ;;  %v1260_v57 = vmul.f32 %v2043_v51, %v1258_v2 }
 0x45d   : > { %v1264_v3 = vadd.f32 %v1262_v4, %v1260_v57 }
 0x45f   : > { %v1675_v15 = vpack.c.bf16 %v1264_v3, %v1263_v56  ;;  %1277 = vst [vmem:[#allocation2 + $0x8] sm:$0xff] %v1264_v3 }
 0x461   : > { %1676 = vst [vmem:[#allocation4 + $0x18] sm:$0xff] %v1675_v15  }
 0x468   : > { %v1963_v44 = vld [vmem:[#allocation4 + $0x18] sm:$0xff]  }
 0x469   : > { %1841 = vmatmul.mubr.bf16.gmra.mxu0 %v1963_v44 }
 0x529   : > { %v1842_v55 = vpop.f32.mrf.mxu0 }
 0x52a   : > { %v1440_v59 = vadd.f32 %v1842_v55, %v1630_v24 }
 0x52b   : > { %v1431_v60 = vpop.f32.mrf.mxu0 }
 0x52c   : > { %1452 = vst [vmem:[%s2309_s15 + $0x30] sm:$0xff] %v1440_v59  ;;  %v1432_v38 = vadd.f32 %v1630_v24, %v1431_v60 }
 0x52d   : > { %v1843_v49 = vpop.f32.mrf.mxu0 }
 0x52e   : > { %1450 = vst [vmem:[%s2309_s15 + $0x20] sm:$0xff] %v1432_v38  ;;  %v1443_v54 = vadd.f32 %v1843_v49, %v1630_v24 }
 0x52f   : > { %v1434_v12 = vpop.f32.mrf.mxu0 }
 0x530   : > { %1453 = vst [vmem:[%s2309_s15 + $0x38] sm:$0xff] %v1443_v54  ;;  %v1435_v41 = vadd.f32 %v1630_v24, %v1434_v12 }
 0x532   : > { %1451 = vst [vmem:[%s2309_s15 + $0x28] sm:$0xff] %v1435_v41 }
 0x533   : > { %2109 = shalt.err (!%p2106_p3)
}
 0x534   : > { %s2110_s29 = scalar_lea.hbm %s2676_s13, 1024  ;;  %s2114_s20 = scalar_lea.hbm %s2730_s6, 2048 }
 0x535   : > { %p2111_p7 = scmp.ne.s32.totalorder %s2676_s13, %s2110_s29  ;;  %p2115_p6 = scmp.lt.s32.totalorder %s2676_s13, %s2730_s6 }
 0x536   : > { %p2116_p10 = scmp.lt.s32.totalorder %s2114_s20, %s2110_s29 }
 0x537   : > { %p2112_p9 = pnand %p2111_p7, %p2250_p5 }
 0x538   : > { %p2117_p11 = por %p2116_p10, %p2115_p6 }
 0x539   : > { %p2113_p0 = pneg %p2112_p9 }
 0x53b   : > { %p2118_p13 = pnand %p2117_p11, %p2113_p0 }
 0x53d   : > { %2121 = shalt.err (!%p2118_p13)
}
 0x53e   : > { %s2175_s10 = smov 128   ;;  %s2176_s11 = smov 8  }
 0x53f   : > { %1852 = dma.vmem_to_hbm [thread:$0]  (%p2250_p5), %s2678_s9, 1024, %s2676_s13, %s2684_s25, %s2175_s10, %s2175_s10, %s2176_s11  }
 0x540 PF: > { %p1869_p8 = scmp.ge.s32.totalorder %s2164_s24, 2  ;;  %s1483_s12 = sand.u32 1, %s2152_s21  }
 0x541   : > { %p2751_p12 = scmp.ne.s32.totalorder %s2737_s8, 0  ;;  %s1484_s14 = scalar_lea.sflag [#allocation7], %s1483_s12 }
 0x543   : > { %p1862_p1 = pnand %p1869_p8, %p2751_p12 }
 0x545   : > { %p1863_p2 = pneg %p1862_p1 }
 0x547   : > { %2147 = dma.done.wait (%p1863_p2), %s1484_s14, 1024  }
 0x548   : > { %2149 = vsyncadd (%p1863_p2), %s1484_s14, 4294966272  ;;  %p18_p4 = scmp.ge.s32.totalorder %s2237_s27, 4   ;;  %s2752_s21 = smov %s2156_s22 }
 0x549   : > { %s2753_s22 = smov %s2160_s23  ;;  %s2754_s23 = smov %s2248_s30 }
 0x54a   : > { %s2755_s24 = smov %s2237_s27  ;;  %20 = sbr.rel (!%p18_p4) target bundleno = 5 (0x5), region = 99 }
 0x54f   :  { %1489 = vsyncpa [#allocation6], 1 }
 0x550   :  { %1491 = vsyncpa [#allocation6 + $0x1], 1 }
 0x551   :  { %1492 = vsyncpa [#allocation9], 1 }
 0x552   :  { %1493 = vsyncpa [#allocation7], 1 }
 0x553   :  { %1495 = vsyncpa [#allocation7 + $0x1], 1 }

</bundles_post_ra>
